<compile_context>
chip_gen: v7x
topology: tpu7x:2x2x1
jax: 0.10.0
libtpu: 0.0.40
codegen_flags: <defaults>
</compile_context>

<pallas_src>
import math
from functools import partial

import jax
import jax.numpy as jnp
from jax.experimental import pallas as pl
from jax.experimental.pallas import tpu as pltpu


def _round_up(x: int, m: int) -> int:
    return ((x + m - 1) // m) * m


# ----------------------------- Pallas kernel ------------------------------ #
def _grouped_linear_kernel(gid_ref, x_ref, wt_ref, b_ref, o_ref, acc_ref):
    # gid_ref : (num_row_tiles,) SMEM scalar-prefetch table (used only by index_maps)
    # x_ref   : (tm, tk)   bf16/f32  activation tile of the packed row slab
    # wt_ref  : (tk, tn)   bf16/f32  pre-transposed, padded weight tile of this row
    #                                tile's type (leading type axis squeezed)
    # b_ref   : (1, tn)    f32       padded bias row of this row tile's type
    # o_ref   : (tm, tn)
    # acc_ref : (tm, tn)   f32       accumulator across the K grid axis
    del gid_ref
    k = pl.program_id(2)

    @pl.when(k == 0)
    def _():
        acc_ref[...] = jnp.zeros_like(acc_ref)

    acc_ref[...] += jnp.dot(x_ref[...], wt_ref[...],
                            preferred_element_type=jnp.float32)

    @pl.when(k == pl.num_programs(2) - 1)
    def _():
        o_ref[...] = (acc_ref[...] + b_ref[...].astype(jnp.float32)).astype(o_ref.dtype)


def _grouped_linear_pallas(x_slab, wt_stack, b_stack, gid, *, tm, tn, tk, out_dtype):
    """out[r*tm:(r+1)*tm] = x_slab[r*tm:(r+1)*tm] @ wt_stack[gid[r]] + b_stack[gid[r]]"""
    R, Kp = x_slab.shape
    T, Kp2, Np = wt_stack.shape
    assert Kp == Kp2 and R % tm == 0 and Np % tn == 0 and Kp % tk == 0
    nj, ni, nk = Np // tn, R // tm, Kp // tk

    in_isz = jnp.dtype(x_slab.dtype).itemsize
    out_isz = jnp.dtype(out_dtype).itemsize
    cost = pl.CostEstimate(
        flops=2 * R * Kp * Np,
        transcendentals=0,
        bytes_accessed=(x_slab.size * nj + wt_stack.size) * in_isz
                       + b_stack.size * 4 + R * Np * out_isz,
    )

    # Per-step VMEM working set (double-buffered streams + f32 accumulator) with headroom;
    # explicit so we never rely on the (generation-dependent) default scoped limit.
    est = (2 * (tm * tk + tk * tn) * in_isz     # x + weight streams (double-buffered)
           + 2 * tm * tn * out_isz              # output blocks
           + 2 * tn * 4                         # bias blocks (f32)
           + tm * tn * 4)                       # accumulator scratch
    vmem_limit = int(min(max(4 * est, 32 << 20), 48 << 20))

    return pl.pallas_call(
        _grouped_linear_kernel,
        out_shape=jax.ShapeDtypeStruct((R, Np), out_dtype),
        grid_spec=pltpu.PrefetchScalarGridSpec(
            num_scalar_prefetch=1,
            # N tiles outermost, row tiles next, K (reduction) innermost.  Row tiles of
            # the same type hit the same weight/bias block -> re-DMA is skipped.
            grid=(nj, ni, nk),
            in_specs=[
                # activation rows: tile along packed-row axis and along K.
                pl.BlockSpec((tm, tk), lambda j, i, k, gid: (i, k)),
                # weight chunk of the type owning row-tile i (type axis squeezed).
                pl.BlockSpec((None, tk, tn), lambda j, i, k, gid: (gid[i], k, j)),
                # bias of the type owning row-tile i.
                pl.BlockSpec((None, 1, tn), lambda j, i, k, gid: (gid[i], 0, j)),
            ],
            out_specs=pl.BlockSpec((tm, tn), lambda j, i, k, gid: (i, j)),
            scratch_shapes=[pltpu.VMEM((tm, tn), jnp.float32)],
        ),
        compiler_params=pltpu.CompilerParams(
            # On v7x, if the outer N axis is degenerate the row axis (also "parallel")
            # carries the megacore split.
            dimension_semantics=("parallel", "parallel", "arbitrary"),
            vmem_limit_bytes=vmem_limit,
        ),
        cost_estimate=cost,
    )(gid, x_slab, wt_stack, b_stack)


# --------------------------- parameter handling ----------------------------- #
def init_hetero_dict_linear(key, in_channels: dict, out_channels: int, dtype=jnp.float32):
    """Matches torch defaults: weight ~ kaiming_uniform(a=sqrt(5)), bias ~ U(+-1/sqrt(fan_in))."""
    params = {}
    for t, c_in in in_channels.items():
        key, kw, kb = jax.random.split(key, 3)
        bound = 1.0 / math.sqrt(c_in)
        w = jax.random.uniform(kw, (out_channels, c_in), dtype, -bound, bound)
        b = jax.random.uniform(kb, (out_channels,), dtype, -bound, bound)
        params[t] = {"weight": w, "bias": b}
    return params


def pack_hetero_params(params: dict, types, out_channels: int,
                       compute_dtype=jnp.bfloat16, max_tk: int = 1024):
    """Pack weights/biases ONCE: pre-transpose to (K, N), zero-pad K and N to lane-dense
    multiples of 128, cast weights to the compute dtype (bf16 by default; bias stays f32
    for exact accumulation), and stack over types."""
    types = tuple(types)
    k_pad = _round_up(max(params[t]["weight"].shape[1] for t in types), 128)
    if k_pad > max_tk:
        tk = 512
        k_pad = _round_up(k_pad, tk)
    else:
        tk = k_pad
    n_pad = _round_up(out_channels, 128)

    wt_list, b_list = [], []
    for t in types:
        w = params[t]["weight"]          # (N, K_t)  torch layout
        b = params[t]["bias"]            # (N,)
        n, k = w.shape
        wt = jnp.zeros((k_pad, n_pad), compute_dtype).at[:k, :n].set(
            w.T.astype(compute_dtype))
        bp = jnp.zeros((1, n_pad), jnp.float32).at[0, :n].set(b.astype(jnp.float32))
        wt_list.append(wt)
        b_list.append(bp)
    return {
        "types": types,
        "k_pad": k_pad,
        "n_pad": n_pad,
        "tk": tk,
        "out_channels": out_channels,
        "wt_stack": jnp.stack(wt_list),  # (T, k_pad, n_pad)  compute_dtype
        "b_stack": jnp.stack(b_list),    # (T, 1, n_pad)      f32
    }


def _pick_tn(n_pad: int) -> int:
    # 256 keeps the MXU wide on v6e/v7x yet fits v7x's 64 MiB VMEM; fall back to 128.
    for cand in (256, 128):
        if n_pad % cand == 0:
            return cand
    return 128


# ------------------------------- forward ----------------------------------- #
@partial(jax.jit,
         static_argnames=("types", "out_channels", "k_pad", "n_pad", "tk", "tm_max"))
def _forward_impl(x_dict, wt_stack, b_stack, *, types, out_channels, k_pad, n_pad,
                  tk, tm_max):
    compute_dtype = wt_stack.dtype
    tn = _pick_tn(n_pad)

    # Adaptive row tile: don't pad tiny node sets to 128 rows of zeros.  After the grid
    # swap a small tm no longer multiplies weight traffic; only per-step overhead grows.
    max_rows = max(max(int(x_dict[t].shape[0]) for t in types), 1)
    tm = min(tm_max, _round_up(max_rows, 8))

    # Pack all types' rows into one slab; zero padding of rows / K / N is exact for
    # x @ W^T + b (padded rows are sliced away below).
    slabs, gids, row_info = [], [], {}
    row = 0
    for gi, t in enumerate(types):
        x = x_dict[t]
        m, k = x.shape
        m_pad = _round_up(max(m, 1), tm)
        xp = jnp.zeros((m_pad, k_pad), compute_dtype).at[:m, :k].set(
            x.astype(compute_dtype))
        slabs.append(xp)
        gids.extend([gi] * (m_pad // tm))
        row_info[t] = (row, m)
        row += m_pad
    x_slab = jnp.concatenate(slabs, axis=0)              # (R_total, k_pad)
    gid = jnp.asarray(gids, dtype=jnp.int32)              # compile-time constant table

    out_slab = _grouped_linear_pallas(
        x_slab, wt_stack, b_stack, gid, tm=tm, tn=tn, tk=tk, out_dtype=jnp.float32)

    return {
        t: out_slab[r:r + m, :out_channels].astype(x_dict[t].dtype)
        for t, (r, m) in row_info.items()
    }


def hetero_dict_linear_forward(x_dict: dict, packed: dict, *, tm_max: int = 128) -> dict:
    """HeteroDictLinear forward: one fused grouped-matmul Pallas call over all type keys."""
    return _forward_impl(
        x_dict, packed["wt_stack"], packed["b_stack"],
        types=packed["types"], out_channels=packed["out_channels"],
        k_pad=packed["k_pad"], n_pad=packed["n_pad"], tk=packed["tk"], tm_max=tm_max)


# --------------------------------- main ------------------------------------ #
if __name__ == "__main__":
    key = jax.random.PRNGKey(0)

    # Heterogeneous input channels per type (dict-form constructor).
    in_channels = {"author": 16, "paper": 32}
    out_channels = 32

    k0, k1, k2 = jax.random.split(key, 3)
    x_dict = {
        "author": jax.random.normal(k1, (8, in_channels["author"]), jnp.float32),
        "paper": jax.random.normal(k2, (6, in_channels["paper"]), jnp.float32),
    }

    params = init_hetero_dict_linear(k0, in_channels, out_channels)
    packed = pack_hetero_params(params, list(in_channels.keys()), out_channels)

    out_dict = hetero_dict_linear_forward(x_dict, packed)
    out_dict = jax.tree_util.tree_map(jax.block_until_ready, out_dict)

    # Reference check against plain JAX (x @ W^T + b) per key.
    # bf16 weights/activations with f32 accumulation -> loosened tolerance.
    ok = True
    for k in x_dict:
        ref = x_dict[k] @ params[k]["weight"].T + params[k]["bias"]
        ok &= bool(jnp.allclose(out_dict[k], ref, atol=2e-2, rtol=2e-2))
        assert out_dict[k].shape == (x_dict[k].shape[0], out_channels)
        assert out_dict[k].dtype == x_dict[k].dtype

    print("KERNEL_OK" if ok else "MISMATCH")
</pallas_src>

<mosaic_0001>
module attributes {stable_mosaic.version = 11 : i64} {
  func.func @_grouped_linear_kernel(%arg0: i32, %arg1: i32, %arg2: i32, %arg3: memref<2xi32, #tpu.memory_space<smem>>, %arg4: memref<8x128xbf16, #tpu.memory_space<vmem>>, %arg5: memref<1x128x128xbf16, #tpu.memory_space<vmem>>, %arg6: memref<1x1x128xf32, #tpu.memory_space<vmem>>, %arg7: memref<8x128xf32, #tpu.memory_space<vmem>>, %arg8: memref<8x128xf32, #tpu.memory_space<vmem>>) attributes {dimension_semantics = [#tpu.dimension_semantics<parallel>, #tpu.dimension_semantics<parallel>, #tpu.dimension_semantics<arbitrary>], iteration_bounds = array<i64: 1, 2, 1>, scalar_prefetch = 1 : i64, scratch_operands = 1 : i64, tpu.core_type = #tpu.core_type<tc>, window_params = [{transform_indices = @transform_0, window_bounds = array<i64: 8, 128>}, {transform_indices = @transform_1, window_bounds = array<i64: 1, 128, 128>}, {transform_indices = @transform_2, window_bounds = array<i64: 1, 1, 128>}, {transform_indices = @transform_3, window_bounds = array<i64: 8, 128>}]} {
    %c0_i32 = arith.constant 0 : i32
    %0 = arith.cmpi eq, %arg2, %c0_i32 : i32
    %1 = arith.extui %0 : i1 to i32
    %c0_i32_0 = arith.constant 0 : i32
    %2 = arith.cmpi ne, %1, %c0_i32_0 : i32
    scf.if %2 {
      %cst_11 = arith.constant 0.000000e+00 : f32
      %13 = vector.broadcast %cst_11 : f32 to vector<8x128xf32>
      %c0_12 = arith.constant 0 : index
      %c0_13 = arith.constant 0 : index
      %14 = vector.load %arg8[%c0_12, %c0_13] : memref<8x128xf32, #tpu.memory_space<vmem>>, vector<8x128xf32>
      tpu.vector_store %arg8[%c0_12, %c0_13], %13 {strides = array<i32>} : memref<8x128xf32, #tpu.memory_space<vmem>>, vector<8x128xf32>,
    } else {
    }
    %c0 = arith.constant 0 : index
    %c0_1 = arith.constant 0 : index
    %3 = vector.load %arg8[%c0, %c0_1] : memref<8x128xf32, #tpu.memory_space<vmem>>, vector<8x128xf32>
    %c0_2 = arith.constant 0 : index
    %c0_3 = arith.constant 0 : index
    %4 = vector.load %arg4[%c0_2, %c0_3] : memref<8x128xbf16, #tpu.memory_space<vmem>>, vector<8x128xbf16>
    %c0_4 = arith.constant 0 : index
    %c0_5 = arith.constant 0 : index
    %c0_6 = arith.constant 0 : index
    %5 = vector.load %arg5[%c0_4, %c0_5, %c0_6] : memref<1x128x128xbf16, #tpu.memory_space<vmem>>, vector<1x128x128xbf16>
    %6 = vector.shape_cast %5 : vector<1x128x128xbf16> to vector<128x128xbf16>
    %cst = arith.constant dense<0.000000e+00> : vector<8x128xf32>
    %7 = tpu.matmul %4, %6, %cst {dimension_numbers = #tpu.dot_dimension_numbers<[1], [0], [0], [1], [0, 0, 1, 1], [], []>} : vector<8x128xbf16>, vector<128x128xbf16>, vector<8x128xf32> -> vector<8x128xf32>
    %8 = arith.addf %3, %7 : vector<8x128xf32>
    %c0_7 = arith.constant 0 : index
    %c0_8 = arith.constant 0 : index
    %9 = vector.load %arg8[%c0_7, %c0_8] : memref<8x128xf32, #tpu.memory_space<vmem>>, vector<8x128xf32>
    tpu.vector_store %arg8[%c0_7, %c0_8], %8 {strides = array<i32>} : memref<8x128xf32, #tpu.memory_space<vmem>>, vector<8x128xf32>,
    %c0_i32_9 = arith.constant 0 : i32
    %10 = arith.cmpi eq, %arg2, %c0_i32_9 : i32
    %11 = arith.extui %10 : i1 to i32
    %c0_i32_10 = arith.constant 0 : i32
    %12 = arith.cmpi ne, %11, %c0_i32_10 : i32
    scf.if %12 {
      %c0_11 = arith.constant 0 : index
      %c0_12 = arith.constant 0 : index
      %13 = vector.load %arg8[%c0_11, %c0_12] : memref<8x128xf32, #tpu.memory_space<vmem>>, vector<8x128xf32>
      %c0_13 = arith.constant 0 : index
      %c0_14 = arith.constant 0 : index
      %c0_15 = arith.constant 0 : index
      %14 = vector.load %arg6[%c0_13, %c0_14, %c0_15] : memref<1x1x128xf32, #tpu.memory_space<vmem>>, vector<1x1x128xf32>
      %15 = vector.shape_cast %14 : vector<1x1x128xf32> to vector<1x128xf32>
      %16 = vector.broadcast %15 : vector<1x128xf32> to vector<8x128xf32>
      %17 = arith.addf %13, %16 : vector<8x128xf32>
      %c0_16 = arith.constant 0 : index
      %c0_17 = arith.constant 0 : index
      %18 = vector.load %arg7[%c0_16, %c0_17] : memref<8x128xf32, #tpu.memory_space<vmem>>, vector<8x128xf32>
      tpu.vector_store %arg7[%c0_16, %c0_17], %17 {strides = array<i32>} : memref<8x128xf32, #tpu.memory_space<vmem>>, vector<8x128xf32>,
    } else {
    }
    return
  }
  func.func @transform_0(%arg0: i32, %arg1: i32, %arg2: i32, %arg3: memref<2xi32, #tpu.memory_space<smem>>) -> (i32, i32) {
    %c0_i32 = arith.constant 0 : i32
    return %arg1, %arg2 : i32, i32
  }
  func.func @transform_1(%arg0: i32, %arg1: i32, %arg2: i32, %arg3: memref<2xi32, #tpu.memory_space<smem>>) -> (i32, i32, i32) {
    %0 = arith.index_cast %arg1 : i32 to index
    %1 = memref.load %arg3[%0] : memref<2xi32, #tpu.memory_space<smem>>
    %c0_i32 = arith.constant 0 : i32
    return %1, %arg2, %arg0 : i32, i32, i32
  }
  func.func @transform_2(%arg0: i32, %arg1: i32, %arg2: i32, %arg3: memref<2xi32, #tpu.memory_space<smem>>) -> (i32, i32, i32) {
    %0 = arith.index_cast %arg1 : i32 to index
    %1 = memref.load %arg3[%0] : memref<2xi32, #tpu.memory_space<smem>>
    %c0_i32 = arith.constant 0 : i32
    %c0_i32_0 = arith.constant 0 : i32
    return %1, %c0_i32, %arg0 : i32, i32, i32
  }
  func.func @transform_3(%arg0: i32, %arg1: i32, %arg2: i32, %arg3: memref<2xi32, #tpu.memory_space<smem>>) -> (i32, i32) {
    %c0_i32 = arith.constant 0 : i32
    return %arg1, %arg0 : i32, i32
  }
}

</mosaic_0001>

<bundles_post_ra>
// kernel: _forward_impl.1
= control target key start
LH: loop header
LB: loop body
LE: loop exit
PB: predicated region body
PF: predicated region fallthrough
CT: control target
= control target key end

     0   :  { %s924_s0 = inlined_call_operand.vmem [shape: s32[2], index: 0, kind: input, shape index: {}]   ;;  %s925_s1 = inlined_call_operand.vmem [shape: bf16[16,128], index: 1, kind: input, shape index: {}]   ;;  %s926_s2 = inlined_call_operand.hbm [shape: bf16[2,128,128], index: 2, kind: input, shape index: {}]   ;;  %s927_s3 = inlined_call_operand.vmem [shape: f32[2,1,128], index: 3, kind: input, shape index: {}]   ;;  %s928_s4 = inlined_call_operand.vmem [shape: f32[16,128], index: 4, kind: output, shape index: {}]  }
   0x1   :  { %s9_s17 = sshll.u32 %s924_s0, 4  ;;  %s10_s17 = int_to_ptr.vmem [resolvable:$true] %s9_s17 }
   0x2   :  { %s663_s18 = scalar_lea.vmem %s10_s17, 16  ;;  %p668_p1 = scmp.lt.s32.totalorder %s10_s17, %s10_s17 }
   0x3   :  { %p664_p0 = scmp.ne.s32.totalorder %s10_s17, %s663_s18  ;;  %p669_p2 = scmp.lt.s32.totalorder %s663_s18, %s663_s18 }
   0x5   :  { %p670_p3 = por %p669_p2, %p668_p1 }
   0x7   :  { %p671_p4 = pnand %p670_p3, %p664_p0 }
   0x9   :  { %674 = shalt.err (!%p671_p4)  }
   0xa   :  { %s759_s19 = smov [#allocation4]  }
   0xb   :  { %12 = dma.vmem_to_smem %s10_s17, 16, %s759_s19, [#allocation3] }
   0xc   :  { %729 = dma.done.wait [#allocation3], 16 }
   0xd   :  { %730 = vsyncadd [#allocation3], 4294967280 }
   0xe   :  { %14 = sfence }
   0xf   :  { %15 = vsyncpa [#allocation6], 0 }
  0x10   :  { %17 = vsyncpa [#allocation6 + $0x1], 0  ;;  %s793_s20 = smov 0   ;;  %s795_s21 = smov 0  }
  0x11   :  { %s797_s0 = smov 0   ;;  %s799_s22 = smov 0  }
  0x12   :  { %s801_s23 = smov 0   ;;  %s803_s24 = smov 0  }
  0x13 LB: > { %s38_s25 = sadd.s32 1, %s753_s23  ;;  %s539_s26 = sadd.s32 4294967295, %s757_s24   ;;  %s757_s24 = sphi %s803_s24, %s23_s24   ;;  %s753_s23 = sphi %s801_s23, %s938_s23   ;;  %s749_s22 = sphi %s799_s22, %s937_s22   ;;  %s745_s0 = sphi %s797_s0, %s936_s0   ;;  %s741_s21 = sphi %s795_s21, %s935_s21   ;;  %s737_s20 = sphi %s793_s20, %s934_s20  }
  0x14   : > { %p40_p5 = scmp.ge.s32.totalorder %s38_s25, 2  ;;  %s74_s27 = sld [smem:[#allocation4 + %s753_s23]] }
  0x15   : > { %p90_p6 = scmp.ne.s32.totalorder %s745_s0, %s741_s21  ;;  %p91_p7 = scmp.eq.s32.totalorder %s757_s24, 0 }
  0x16   : > { %s940_s25 = smov (%p40_p5, %s38_s25), 0  ;;  %p96_p8 = scmp.ne.s32.totalorder %s741_s21, %s737_s20 }
  0x17   : > { %s75_s28 = sld [smem:[#allocation4 + %s940_s25]]  ;;  %p97_p9 = scmp.eq.s32.totalorder %s539_s26, 0 }
  0x18   : > { %s188_s30 = sand.u32 1, %s745_s0   ;;  %p92_p11 = por %p91_p7, %p90_p6 }
  0x19   : > { %p831_p10 = por %p97_p9, %p96_p8  ;;  %s83_s5 = sadd.s32 1, %s745_s0 }
  0x1a   : > { %p601_p12 = scmp.lt.s32.totalorder %s757_s24, 2  ;;  %s543_s7 = sshll.u32 %s188_s30, 6 }
  0x1b   : > { %s930_s29 = scalar_select %p831_p10, 1, 0 }
  0x1c   : > { %p838_p0 = pnand %p601_p12, %p92_p11  ;;  %p546_p1 = scmp.ge.s32.totalorder %s757_s24, 1 }
  0x1d   : > { %s76_s6 = ssub.s32 %s74_s27, %s75_s28  ;;  %p222_p2 = scmp.lt.s32.totalorder %s757_s24, 3 }
  0x1e   : > { %p81_p13 = scmp.eq.s32.totalorder %s76_s6, 0  ;;  %s192_s13 = scalar_lea.vmem [#allocation5], %s543_s7 }
  0x1f   : > { %s591_s9 = scalar_select %p92_p11, [#allocation4], [#allocation7] }
  0x20   : > { %s843_s10 = scalar_select %p81_p13, %s745_s0, %s83_s5  }
  0x21   : > { %s592_s11 = scalar_select %p92_p11, %s753_s23, 0 }
  0x22   : > { %s942_s9 = smov (!%p601_p12, %s591_s9), [#allocation8]  ;;  %s203_s14 = sshll.u32 %s192_s13, 4  ;;  %s852_s14 = int_to_ptr.vmem [resolvable:$true] %s203_s14 }
  0x23   : > { %s944_s11 = smov (!%p601_p12, %s592_s11), 0  ;;  %p848_p3 = pnand %p546_p1, %p222_p2 }
  0x24   : > { %s193_s12 = sld [smem:[%s942_s9 + %s944_s11]]  ;;  %s859_s20 = scalar_lea.sflag [#allocation6], %s188_s30 }
  0x25   : > { %p677_p5 = pneg %p838_p0  ;;  %s680_s5 = scalar_lea.hbm %s926_s2, 2048 }
  0x2a   : > { %s561_s16 = sshll.u32 %s193_s12, 10 }
  0x2b   : > { %s857_s19 = scalar_lea.hbm %s926_s2, %s561_s16 }
  0x2c   : > { %s675_s26 = scalar_lea.hbm %s857_s19, 1024  ;;  %p681_p8 = scmp.lt.u32.totalorder %s857_s19, %s926_s2 }
  0x2d   : > { %p676_p4 = scmp.ne.s32.totalorder %s857_s19, %s675_s26  ;;  %p682_p9 = scmp.lt.u32.totalorder %s680_s5, %s675_s26 }
  0x2e   : > { %p684_p12 = scmp.lt.u32.totalorder %s675_s26, %s857_s19 }
  0x2f   : > { %p678_p6 = pnand %p677_p5, %p676_p4  ;;  %p683_p11 = por %p682_p9, %p681_p8 }
  0x31   : > { %p679_p7 = pneg %p678_p6  ;;  %p685_p13 = por %p684_p12, %p683_p11 }
  0x33   : > { %p686_p1 = pnand %p685_p13, %p679_p7 }
  0x35   : > { %689 = shalt.err (!%p686_p1)
}
  0x36   : > { %s690_s30 = scalar_lea.vmem %s852_s14, 1024  ;;  %s760_s9 = smov [#allocation5]  }
  0x37   : > { %p691_p2 = scmp.ne.s32.totalorder %s852_s14, %s690_s30  ;;  %s695_s11 = sshll.u32 %s760_s9, 4  ;;  %s696_s11 = int_to_ptr.vmem [resolvable:$false] %s695_s11 }
  0x38   : > { %s697_s12 = scalar_lea.vmem %s696_s11, 2048  ;;  %p698_p10 = scmp.lt.s32.totalorder %s852_s14, %s696_s11 }
  0x39   : > { %p693_p4 = pnand %p691_p2, %p677_p5  ;;  %p699_p8 = scmp.lt.s32.totalorder %s697_s12, %s690_s30 }
  0x3b   : > { %p694_p6 = pneg %p693_p4  ;;  %p700_p9 = por %p699_p8, %p698_p10 }
  0x3d   : > { %p701_p11 = pnand %p700_p9, %p694_p6 }
  0x3f   : > { %704 = shalt.err (!%p701_p11)
}
  0x40   : > { %s761_s13 = smov 64   ;;  %s762_s16 = smov 4  }
  0x41   : > { %600 = dma.hbm_to_vmem [thread:$0]  (!%p838_p0), %s857_s19, 1024, %s852_s14, %s859_s20, %s761_s13, %s761_s13, %s762_s16  }
  0x42   : > { %226 = sbr.rel (%p848_p3) target bundleno = 322 (0x142), region = 32  ;;  %s228_s17 = sand.u32 (!%p848_p3), 1, %s741_s21  }
  0x43   : > { %s547_s18 = sshll.u32 (!%p848_p3), %s228_s17, 6  ;;  %s229_s26 = scalar_lea.sflag (!%p848_p3), [#allocation6], %s228_s17 }
  0x44   : > { %s232_s27 = scalar_lea.vmem (!%p848_p3), [#allocation5], %s547_s18  ;;  %p933_p10 = scmp.ne.s32.totalorder (!%p848_p3), %s930_s29, 0 }
  0x49   : > { %732 = dma.done.wait (%p933_p10), %s229_s26, 1024  }
  0x4a   : > { %734 = vsyncadd (%p933_p10), %s229_s26, 4294966272  ;;  %v763_v0 = vmov 0.0   ;;  %vm764_vm0 = vmmov 0   ;;  %v655_v1 = vld [vmem:[%s232_s27] sm:$0xff]   ;;  %v656_v2 = vld [vmem:[%s232_s27 + $0x8] sm:$0xff]   ;;  %p271_p0 = scmp.lt.s32.totalorder %s749_s22, 1 }
  0x4b   : > { %571 = vmatprep.subr.bf16.mxu0 %v763_v0  ;;  %587 = vmatprep.mubr.msk.bf16.mxu0 %vm764_vm0, %v763_v0  ;;  %v657_v3 = vld [vmem:[%s232_s27 + $0x10] sm:$0xff]   ;;  %v658_v4 = vld [vmem:[%s232_s27 + $0x18] sm:$0xff]   ;;  %v659_v5 = vld [vmem:[%s232_s27 + $0x20] sm:$0xff]   ;;  %s280_s20 = sld [smem:[#allocation4 + %s749_s22]] }
  0x4c   : > { %572 = vmatpush3.bf16.msra.mxu0 %v655_v1  ;;  %v660_v6 = vld [vmem:[%s232_s27 + $0x28] sm:$0xff]   ;;  %s272_s29 = scalar_select %p271_p0, %s749_s22, 1  ;;  %v661_v7 = vld [vmem:[%s232_s27 + $0x30] sm:$0xff]   ;;  %v662_v8 = vld [vmem:[%s232_s27 + $0x38] sm:$0xff]  }
  0x4d   : > { %573 = vmatprep.subr.bf16.mxu0 %v763_v0 }
  0x4e   : > { %s548_s8 = sshll.u32 %s272_s29, 2  ;;  %s549_s7 = sshll.u32 %s272_s29, 3 }
  0x4f   : > { %s277_s19 = scalar_lea.vmem %s925_s1, %s548_s8  ;;  %s294_s11 = scalar_lea.vmem %s928_s4, %s549_s7 }
  0x50   : > { %574 = vmatpush3.bf16.msra.mxu0 %v656_v2  ;;  %v302_v9 = vld [vmem:[%s277_s19] sm:$0xf] }
  0x51   : > { %575 = vmatprep.subr.bf16.mxu0 %v763_v0  ;;  %p281_p3 = scmp.lt.s32.totalorder %s280_s20, 1 }
  0x53   : > { %s946_s20 = smov (!%p281_p3, %s280_s20), 1 }
  0x54   : > { %576 = vmatpush3.bf16.msra.mxu0 %v657_v3  ;;  %s286_s6 = scalar_lea.vmem %s927_s3, %s946_s20 }
  0x55   : > { %577 = vmatprep.subr.bf16.mxu0 %v763_v0  ;;  %v558_v10 = vld [vmem:[%s286_s6] ss:$0 sm:$0xff] }
  0x58   : > { %578 = vmatpush3.bf16.msra.mxu0 %v658_v4 }
  0x59   : > { %579 = vmatprep.subr.bf16.mxu0 %v763_v0 }
  0x5c   : > { %580 = vmatpush3.bf16.msra.mxu0 %v659_v5 }
  0x5d   : > { %581 = vmatprep.subr.bf16.mxu0 %v763_v0 }
  0x60   : > { %582 = vmatpush3.bf16.msra.mxu0 %v660_v6 }
  0x61   : > { %583 = vmatprep.subr.bf16.mxu0 %v763_v0 }
  0x64   : > { %584 = vmatpush3.bf16.msra.mxu0 %v661_v7 }
  0x65   : > { %585 = vmatprep.subr.bf16.mxu0 %v763_v0 }
  0x68   : > { %586 = vmatpush3.bf16.msra.mxu0 %v662_v8 }
  0x6b   : > { %588 = vmatmul.mubr.bf16.vlgmr.msra.gmra.mrb[0].mxu0 %v302_v9 }
 0x13e   : > { %v401_v11 = vpop.f32.mrb[0].mxu0 }
 0x13f   : > { %v420_v12 = vadd.f32 %v558_v10, %v401_v11  ;;  %v589_v13 = vpop.f32.mrb[1].mxu0 }
 0x140   : > { %v404_v14 = vpop.f32.mrb[2].mxu0 }
 0x141   : > { %421 = vst [vmem:[%s294_s11] sm:$0xff] %v420_v12  ;;  %v590_v15 = vpop.f32.mrb[3].mxu0 }
 0x142 PF: > { %s23_s24 = sadd.s32 1, %s757_s24   ;;  %s934_s20 = smov %s741_s21 }
 0x143   : > { %p20_p5 = scmp.ge.s32.totalorder %s23_s24, 4   ;;  %s935_s21 = smov %s745_s0 }
 0x144   : > { %s936_s0 = smov %s843_s10  ;;  %s937_s22 = smov %s753_s23 }
 0x145   : > { %s938_s23 = smov %s940_s25  ;;  %22 = sbr.rel (!%p20_p5) target bundleno = 19 (0x13), region = 86 }
 0x14c   :  { %447 = vsyncpa [#allocation6], 1 }
 0x14d   :  { %449 = vsyncpa [#allocation6 + $0x1], 1 }

</bundles_post_ra>
